<compile_context>
chip_gen: v5e
topology: v5e:2x2
jax: 0.10.0
libtpu: 0.0.40
codegen_flags: <defaults>
</compile_context>

<pallas_src>
import functools

import numpy as np
import jax
import jax.numpy as jnp
from jax.experimental import pallas as pl
from jax.experimental.pallas import tpu as pltpu

LANES = 128        # every matmul operand / intermediate / store is 128-lane dense
NEG_INF = -1e30    # only used by the pure-JAX reference


def _layout(n, heads, hidden):
    """Row offsets of each section inside the packed parameter blob (lane dim = LANES)."""
    del hidden
    rows = {}
    r = 0

    def add(name, k):
        nonlocal r
        rows[name] = r
        r += k

    add("w1", LANES)       # layer-1 weight  (rows >= in_channels zero, cols >= P zero)
    add("w2", LANES)       # layer-2 weight
    add("wf", LANES)       # final linear    (cols >= out_channels zero)
    add("adst1", LANES)    # dst-attention coeffs, replicated over source-node lanes
    add("asrc1", LANES)    # src-attention coeffs, replicated over source-node lanes
    add("adst2", LANES)
    add("asrc2", LANES)
    add("blksum", LANES)   # per-head block-of-ones (softmax denominator via matmul)
    add("blk", LANES)      # block-diagonal head indicator (fused aggregation)
    add("diag", max(8, ((n + 7) // 8) * 8))   # diag[i, h*n+j] = (i == j)
    add("tail", 8)         # 1.0 on lanes >= heads*n (keeps reciprocal finite there)
    add("b1", 8)
    add("b2", 8)
    add("bf", 8)
    return rows, r


def pack_params(params, *, n, in_channels, heads, hidden, out_channels):
    """Pack all weights + static indicator matrices into one (rows, 128) f32 blob."""
    P = heads * hidden
    HN = heads * n
    assert P <= LANES and HN <= LANES and in_channels <= LANES
    assert out_channels <= LANES and LANES % n == 0 and n % 8 == 0
    rows, total = _layout(n, heads, hidden)
    blob = np.zeros((total, LANES), np.float32)

    def a_exp(a):
        # (heads, hidden) -> (LANES, LANES): column q = h*n + j (any j) holds att[h, :]
        a = np.asarray(a, np.float32).reshape(heads, hidden)
        m = np.zeros((LANES, LANES), np.float32)
        for h in range(heads):
            m[h * hidden:(h + 1) * hidden, h * n:(h + 1) * n] = a[h][:, None]
        return m

    blob[rows["w1"]:rows["w1"] + in_channels, :P] = np.asarray(params["w1"], np.float32)
    blob[rows["w2"]:rows["w2"] + P, :P] = np.asarray(params["w2"], np.float32)
    blob[rows["wf"]:rows["wf"] + P, :out_channels] = np.asarray(params["wf"], np.float32)
    blob[rows["adst1"]:rows["adst1"] + LANES, :] = a_exp(params["a1_dst"])
    blob[rows["asrc1"]:rows["asrc1"] + LANES, :] = a_exp(params["a1_src"])
    blob[rows["adst2"]:rows["adst2"] + LANES, :] = a_exp(params["a2_dst"])
    blob[rows["asrc2"]:rows["asrc2"] + LANES, :] = a_exp(params["a2_src"])

    blksum = np.zeros((LANES, LANES), np.float32)
    blk = np.zeros((LANES, LANES), np.float32)
    for h in range(heads):
        blksum[h * n:(h + 1) * n, h * n:(h + 1) * n] = 1.0       # same-head lane reducer
        blk[h * n:(h + 1) * n, h * hidden:(h + 1) * hidden] = 1.0  # head channel selector
    blob[rows["blksum"]:rows["blksum"] + LANES, :] = blksum
    blob[rows["blk"]:rows["blk"] + LANES, :] = blk

    diag = np.zeros((n, LANES), np.float32)
    for h in range(heads):
        diag[np.arange(n), h * n + np.arange(n)] = 1.0
    blob[rows["diag"]:rows["diag"] + n, :] = diag

    blob[rows["tail"], HN:] = 1.0
    blob[rows["b1"], :P] = np.asarray(params["b1"], np.float32).reshape(-1)
    blob[rows["b2"], :P] = np.asarray(params["b2"], np.float32).reshape(-1)
    blob[rows["bf"], :out_channels] = np.asarray(params["bf"], np.float32).reshape(-1)
    return blob


def _elu(x):
    return jnp.where(x > 0, x, jnp.exp(x) - 1.0)


def gat_regressor_kernel(x_ref, adj_ref, p_ref, o_ref, *, rows):
    n = x_ref.shape[0]
    reps = LANES // n

    x = x_ref[...]        # (n, 128), features zero-padded past in_channels
    adj = adj_ref[...]    # (n, 128): lanes [0, heads*n) = head-tiled adjacency, rest 0

    blksum = p_ref[rows["blksum"]:rows["blksum"] + LANES, :]
    blk = p_ref[rows["blk"]:rows["blk"] + LANES, :]
    diag = p_ref[rows["diag"]:rows["diag"] + n, :]
    tail = p_ref[rows["tail"]:rows["tail"] + 1, :]
    b1 = p_ref[rows["b1"]:rows["b1"] + 1, :]
    b2 = p_ref[rows["b2"]:rows["b2"] + 1, :]
    bf = p_ref[rows["bf"]:rows["bf"] + 1, :]

    def gat_layer(h, w, a_dst, a_src, b):
        hp = jnp.dot(h, w, preferred_element_type=jnp.float32)          # (n, 128)
        # Batched (all heads at once) attention logits on lanes q = head*n + src:
        #   sd[i, q] = a_dst coefficient of node i for head(q)  (replicated over src)
        #   ss[i, q] = a_src coefficient of node i for head(q)  (replicated over src)
        sd = jnp.dot(hp, a_dst, preferred_element_type=jnp.float32)
        ss = jnp.dot(hp, a_src, preferred_element_type=jnp.float32)
        # Per-source selection: src[0, head*n + j] = a_src coefficient of node j.
        src = jnp.sum(ss * diag, axis=0, keepdims=True)                 # (1, 128)
        e = sd + src                                                    # a_dst_i + a_src_j
        e = jnp.where(e > 0.0, e, 0.2 * e)                              # LeakyReLU(0.2)
        # Single per-row max: constant within each (dst, head) group -> softmax-invariant.
        e = e - jnp.max(e, axis=-1, keepdims=True)
        pe = jnp.exp(e) * adj                                           # single masking step
        # Per-(dst, head) denominator replicated back onto source lanes via one matmul;
        # `tail` keeps the padded lanes >= heads*n at 1 so the reciprocal stays finite.
        # Self-loops guarantee the real denominators are > 0 (no clamp needed).
        denom = jnp.dot(pe, blksum, preferred_element_type=jnp.float32) + tail
        attn = pe * pl.reciprocal(denom)                                # exact reciprocal
        # Fused per-head aggregation: one matmul against a block-diagonal copy of hp.
        hp_bd = jnp.concatenate([hp] * reps, axis=0) * blk              # (128, 128)
        return jnp.dot(attn, hp_bd, preferred_element_type=jnp.float32) + b

    h1 = _elu(gat_layer(x, p_ref[rows["w1"]:rows["w1"] + LANES, :],
                        p_ref[rows["adst1"]:rows["adst1"] + LANES, :],
                        p_ref[rows["asrc1"]:rows["asrc1"] + LANES, :], b1))
    h2 = _elu(gat_layer(h1, p_ref[rows["w2"]:rows["w2"] + LANES, :],
                        p_ref[rows["adst2"]:rows["adst2"] + LANES, :],
                        p_ref[rows["asrc2"]:rows["asrc2"] + LANES, :], b2))
    # Final linear; unused output lanes are exactly 0 (store stays 128-lane dense).
    o_ref[...] = (jnp.dot(h2, p_ref[rows["wf"]:rows["wf"] + LANES, :],
                          preferred_element_type=jnp.float32) + bf)


def make_gat_forward(*, n, in_channels, heads, hidden, out_channels):
    """Build a jitted forward(x, adj, blob) -> (n, out_channels)."""
    rows, total = _layout(n, heads, hidden)
    HN = heads * n
    vmem = pl.BlockSpec(memory_space=pltpu.MemorySpace.VMEM)
    kernel = functools.partial(gat_regressor_kernel, rows=rows)
    call = pl.pallas_call(
        kernel,
        out_shape=jax.ShapeDtypeStruct((n, LANES), jnp.float32),
        in_specs=[vmem, vmem, vmem],
        out_specs=vmem,
    )

    @jax.jit
    def forward(x, adj, blob):
        assert blob.shape == (total, LANES)
        xp = jnp.pad(x.astype(jnp.float32), ((0, 0), (0, LANES - in_channels)))
        adjf = (adj > 0).astype(jnp.float32)
        adj_rep = jnp.pad(jnp.tile(adjf, (1, heads)), ((0, 0), (0, LANES - HN)))
        out = call(xp, adj_rep, blob)
        return out[:, :out_channels]

    return forward


# ---------------- pure-JAX reference (same math, no Pallas) -----------------
def _ref_forward(x, adj, params, *, heads, hidden):
    def layer(h, w, a_src, a_dst, b):
        hp = h @ w
        n = h.shape[0]
        hph = hp.reshape(n, heads, hidden)
        asrc = jnp.einsum("nhc,hc->nh", hph, a_src)
        adst = jnp.einsum("nhc,hc->nh", hph, a_dst)
        e = adst.T[:, :, None] + asrc.T[:, None, :]          # (H, N_dst, N_src)
        e = jnp.where(e > 0, e, 0.2 * e)
        e = jnp.where(adj[None] > 0, e, NEG_INF)
        e = e - jnp.max(e, axis=-1, keepdims=True)
        p = jnp.exp(e) * (adj[None] > 0)
        attn = p / jnp.sum(p, axis=-1, keepdims=True)
        out = jnp.einsum("hij,jhc->ihc", attn, hph).reshape(n, heads * hidden)
        return out + b

    h1 = _elu(layer(x, params["w1"], params["a1_src"], params["a1_dst"], params["b1"]))
    h2 = _elu(layer(h1, params["w2"], params["a2_src"], params["a2_dst"], params["b2"]))
    return h2 @ params["wf"] + params["bf"]


if __name__ == "__main__":
    N = 16            # number of graph nodes
    in_channels = 8
    hidden = 8
    heads = 4
    out_channels = 2  # e.g. latitude / longitude

    key = jax.random.PRNGKey(0)
    ks = jax.random.split(key, 12)

    def init(k, shape, scale=0.1):
        return scale * jax.random.normal(k, shape, dtype=jnp.float32)

    params = {
        "w1": init(ks[0], (in_channels, heads * hidden)),
        "a1_src": init(ks[1], (heads, hidden)),
        "a1_dst": init(ks[2], (heads, hidden)),
        "b1": init(ks[3], (1, heads * hidden)),
        "w2": init(ks[4], (heads * hidden, heads * hidden)),
        "a2_src": init(ks[5], (heads, hidden)),
        "a2_dst": init(ks[6], (heads, hidden)),
        "b2": init(ks[7], (1, heads * hidden)),
        "wf": init(ks[8], (heads * hidden, out_channels)),
        "bf": init(ks[9], (1, out_channels)),
    }

    # Node features.
    x = jax.random.normal(ks[10], (N, in_channels), dtype=jnp.float32)

    # Deterministic graph: undirected ring as a dense adjacency mask + self-loops
    # (matches GATConv(add_self_loops=True) on that edge_index).
    src = jnp.arange(N)
    dst = (src + 1) % N
    edge_src = jnp.concatenate([src, dst])
    edge_dst = jnp.concatenate([dst, src])
    adj = jnp.zeros((N, N), jnp.float32).at[edge_dst, edge_src].set(1.0)
    adj = jnp.maximum(adj, jnp.eye(N, dtype=jnp.float32))

    # Pack parameters ONCE (init-time), keep the blob resident on device.
    blob = jnp.asarray(pack_params(params, n=N, in_channels=in_channels, heads=heads,
                                   hidden=hidden, out_channels=out_channels))
    forward = make_gat_forward(n=N, in_channels=in_channels, heads=heads,
                               hidden=hidden, out_channels=out_channels)

    out = jax.block_until_ready(forward(x, adj, blob))

    ref = _ref_forward(x, adj, params, heads=heads, hidden=hidden)
    assert out.shape == (N, out_channels)
    assert jnp.allclose(out, ref, atol=1e-3, rtol=1e-3), \
        float(jnp.max(jnp.abs(out - ref)))

    print("KERNEL_OK")
</pallas_src>

<mosaic_0001>
module attributes {stable_mosaic.version = 11 : i64} {
  func.func @gat_regressor_kernel(%arg0: memref<16x128xf32, #tpu.memory_space<vmem>>, %arg1: memref<16x128xf32, #tpu.memory_space<vmem>>, %arg2: memref<1200x128xf32, #tpu.memory_space<vmem>>, %arg3: memref<16x128xf32, #tpu.memory_space<vmem>>) attributes {dimension_semantics = [], scalar_prefetch = 0 : i64, scratch_operands = 0 : i64, tpu.core_type = #tpu.core_type<tc>} {
    %c0 = arith.constant 0 : index
    %c0_0 = arith.constant 0 : index
    %0 = vector.load %arg0[%c0, %c0_0] : memref<16x128xf32, #tpu.memory_space<vmem>>, vector<16x128xf32>
    %c0_1 = arith.constant 0 : index
    %c0_2 = arith.constant 0 : index
    %1 = vector.load %arg1[%c0_1, %c0_2] : memref<16x128xf32, #tpu.memory_space<vmem>>, vector<16x128xf32>
    %c896 = arith.constant 896 : index
    %c0_3 = arith.constant 0 : index
    %2 = vector.load %arg2[%c896, %c0_3] : memref<1200x128xf32, #tpu.memory_space<vmem>>, vector<128x128xf32>
    %c1024 = arith.constant 1024 : index
    %c0_4 = arith.constant 0 : index
    %3 = vector.load %arg2[%c1024, %c0_4] : memref<1200x128xf32, #tpu.memory_space<vmem>>, vector<128x128xf32>
    %c1152 = arith.constant 1152 : index
    %c0_5 = arith.constant 0 : index
    %4 = vector.load %arg2[%c1152, %c0_5] : memref<1200x128xf32, #tpu.memory_space<vmem>>, vector<16x128xf32>
    %c1168 = arith.constant 1168 : index
    %c0_6 = arith.constant 0 : index
    %5 = vector.load %arg2[%c1168, %c0_6] : memref<1200x128xf32, #tpu.memory_space<vmem>>, vector<1x128xf32>
    %c1176 = arith.constant 1176 : index
    %c0_7 = arith.constant 0 : index
    %6 = vector.load %arg2[%c1176, %c0_7] : memref<1200x128xf32, #tpu.memory_space<vmem>>, vector<1x128xf32>
    %c1184 = arith.constant 1184 : index
    %c0_8 = arith.constant 0 : index
    %7 = vector.load %arg2[%c1184, %c0_8] : memref<1200x128xf32, #tpu.memory_space<vmem>>, vector<1x128xf32>
    %c1192 = arith.constant 1192 : index
    %c0_9 = arith.constant 0 : index
    %8 = vector.load %arg2[%c1192, %c0_9] : memref<1200x128xf32, #tpu.memory_space<vmem>>, vector<1x128xf32>
    %c0_10 = arith.constant 0 : index
    %c0_11 = arith.constant 0 : index
    %9 = vector.load %arg2[%c0_10, %c0_11] : memref<1200x128xf32, #tpu.memory_space<vmem>>, vector<128x128xf32>
    %c384 = arith.constant 384 : index
    %c0_12 = arith.constant 0 : index
    %10 = vector.load %arg2[%c384, %c0_12] : memref<1200x128xf32, #tpu.memory_space<vmem>>, vector<128x128xf32>
    %c512 = arith.constant 512 : index
    %c0_13 = arith.constant 0 : index
    %11 = vector.load %arg2[%c512, %c0_13] : memref<1200x128xf32, #tpu.memory_space<vmem>>, vector<128x128xf32>
    %cst = arith.constant dense<0.000000e+00> : vector<16x128xf32>
    %12 = tpu.matmul %0, %9, %cst {dimension_numbers = #tpu.dot_dimension_numbers<[1], [0], [0], [1], [0, 0, 1, 1], [], []>} : vector<16x128xf32>, vector<128x128xf32>, vector<16x128xf32> -> vector<16x128xf32>
    %cst_14 = arith.constant dense<0.000000e+00> : vector<16x128xf32>
    %13 = tpu.matmul %12, %10, %cst_14 {dimension_numbers = #tpu.dot_dimension_numbers<[1], [0], [0], [1], [0, 0, 1, 1], [], []>} : vector<16x128xf32>, vector<128x128xf32>, vector<16x128xf32> -> vector<16x128xf32>
    %cst_15 = arith.constant dense<0.000000e+00> : vector<16x128xf32>
    %14 = tpu.matmul %12, %11, %cst_15 {dimension_numbers = #tpu.dot_dimension_numbers<[1], [0], [0], [1], [0, 0, 1, 1], [], []>} : vector<16x128xf32>, vector<128x128xf32>, vector<16x128xf32> -> vector<16x128xf32>
    %15 = arith.mulf %14, %4 : vector<16x128xf32>
    %cst_16 = arith.constant dense<0.000000e+00> : vector<128xf32>
    %16 = vector.multi_reduction <add>, %15, %cst_16 [0] : vector<16x128xf32> to vector<128xf32>
    %17 = vector.shape_cast %16 : vector<128xf32> to vector<1x128xf32>
    %18 = vector.broadcast %17 : vector<1x128xf32> to vector<16x128xf32>
    %19 = arith.addf %13, %18 : vector<16x128xf32>
    %cst_17 = arith.constant 0.000000e+00 : f32
    %20 = vector.broadcast %cst_17 : f32 to vector<16x128xf32>
    %21 = arith.cmpf ogt, %19, %20 : vector<16x128xf32>
    %cst_18 = arith.constant 2.000000e-01 : f32
    %22 = vector.broadcast %cst_18 : f32 to vector<16x128xf32>
    %23 = arith.mulf %22, %19 : vector<16x128xf32>
    %24 = arith.select %21, %19, %23 : vector<16x128xi1>, vector<16x128xf32>
    %cst_19 = arith.constant dense<0xFF800000> : vector<16xf32>
    %25 = vector.multi_reduction <maximumf>, %24, %cst_19 [1] : vector<16x128xf32> to vector<16xf32>
    %26 = vector.shape_cast %25 : vector<16xf32> to vector<16x1xf32>
    %27 = vector.broadcast %26 : vector<16x1xf32> to vector<16x128xf32>
    %28 = arith.subf %24, %27 : vector<16x128xf32>
    %29 = math.exp %28 : vector<16x128xf32>
    %30 = arith.mulf %29, %1 : vector<16x128xf32>
    %cst_20 = arith.constant dense<0.000000e+00> : vector<16x128xf32>
    %31 = tpu.matmul %30, %2, %cst_20 {dimension_numbers = #tpu.dot_dimension_numbers<[1], [0], [0], [1], [0, 0, 1, 1], [], []>} : vector<16x128xf32>, vector<128x128xf32>, vector<16x128xf32> -> vector<16x128xf32>
    %32 = vector.broadcast %5 : vector<1x128xf32> to vector<16x128xf32>
    %33 = arith.addf %31, %32 : vector<16x128xf32>
    %34 = tpu.reciprocal %33 : vector<16x128xf32> -> vector<16x128xf32>
    %35 = arith.mulf %30, %34 : vector<16x128xf32>
    %36 = tpu.concatenate %12, %12, %12, %12, %12, %12, %12, %12 in 0 : vector<16x128xf32>, vector<16x128xf32>, vector<16x128xf32>, vector<16x128xf32>, vector<16x128xf32>, vector<16x128xf32>, vector<16x128xf32>, vector<16x128xf32> -> vector<128x128xf32>
    %37 = arith.mulf %36, %3 : vector<128x128xf32>
    %cst_21 = arith.constant dense<0.000000e+00> : vector<16x128xf32>
    %38 = tpu.matmul %35, %37, %cst_21 {dimension_numbers = #tpu.dot_dimension_numbers<[1], [0], [0], [1], [0, 0, 1, 1], [], []>} : vector<16x128xf32>, vector<128x128xf32>, vector<16x128xf32> -> vector<16x128xf32>
    %39 = vector.broadcast %6 : vector<1x128xf32> to vector<16x128xf32>
    %40 = arith.addf %38, %39 : vector<16x128xf32>
    %cst_22 = arith.constant 0.000000e+00 : f32
    %41 = vector.broadcast %cst_22 : f32 to vector<16x128xf32>
    %42 = arith.cmpf ogt, %40, %41 : vector<16x128xf32>
    %43 = math.exp %40 : vector<16x128xf32>
    %cst_23 = arith.constant 1.000000e+00 : f32
    %44 = vector.broadcast %cst_23 : f32 to vector<16x128xf32>
    %45 = arith.subf %43, %44 : vector<16x128xf32>
    %46 = arith.select %42, %40, %45 : vector<16x128xi1>, vector<16x128xf32>
    %c128 = arith.constant 128 : index
    %c0_24 = arith.constant 0 : index
    %47 = vector.load %arg2[%c128, %c0_24] : memref<1200x128xf32, #tpu.memory_space<vmem>>, vector<128x128xf32>
    %c640 = arith.constant 640 : index
    %c0_25 = arith.constant 0 : index
    %48 = vector.load %arg2[%c640, %c0_25] : memref<1200x128xf32, #tpu.memory_space<vmem>>, vector<128x128xf32>
    %c768 = arith.constant 768 : index
    %c0_26 = arith.constant 0 : index
    %49 = vector.load %arg2[%c768, %c0_26] : memref<1200x128xf32, #tpu.memory_space<vmem>>, vector<128x128xf32>
    %cst_27 = arith.constant dense<0.000000e+00> : vector<16x128xf32>
    %50 = tpu.matmul %46, %47, %cst_27 {dimension_numbers = #tpu.dot_dimension_numbers<[1], [0], [0], [1], [0, 0, 1, 1], [], []>} : vector<16x128xf32>, vector<128x128xf32>, vector<16x128xf32> -> vector<16x128xf32>
    %cst_28 = arith.constant dense<0.000000e+00> : vector<16x128xf32>
    %51 = tpu.matmul %50, %48, %cst_28 {dimension_numbers = #tpu.dot_dimension_numbers<[1], [0], [0], [1], [0, 0, 1, 1], [], []>} : vector<16x128xf32>, vector<128x128xf32>, vector<16x128xf32> -> vector<16x128xf32>
    %cst_29 = arith.constant dense<0.000000e+00> : vector<16x128xf32>
    %52 = tpu.matmul %50, %49, %cst_29 {dimension_numbers = #tpu.dot_dimension_numbers<[1], [0], [0], [1], [0, 0, 1, 1], [], []>} : vector<16x128xf32>, vector<128x128xf32>, vector<16x128xf32> -> vector<16x128xf32>
    %53 = arith.mulf %52, %4 : vector<16x128xf32>
    %cst_30 = arith.constant dense<0.000000e+00> : vector<128xf32>
    %54 = vector.multi_reduction <add>, %53, %cst_30 [0] : vector<16x128xf32> to vector<128xf32>
    %55 = vector.shape_cast %54 : vector<128xf32> to vector<1x128xf32>
    %56 = vector.broadcast %55 : vector<1x128xf32> to vector<16x128xf32>
    %57 = arith.addf %51, %56 : vector<16x128xf32>
    %cst_31 = arith.constant 0.000000e+00 : f32
    %58 = vector.broadcast %cst_31 : f32 to vector<16x128xf32>
    %59 = arith.cmpf ogt, %57, %58 : vector<16x128xf32>
    %cst_32 = arith.constant 2.000000e-01 : f32
    %60 = vector.broadcast %cst_32 : f32 to vector<16x128xf32>
    %61 = arith.mulf %60, %57 : vector<16x128xf32>
    %62 = arith.select %59, %57, %61 : vector<16x128xi1>, vector<16x128xf32>
    %cst_33 = arith.constant dense<0xFF800000> : vector<16xf32>
    %63 = vector.multi_reduction <maximumf>, %62, %cst_33 [1] : vector<16x128xf32> to vector<16xf32>
    %64 = vector.shape_cast %63 : vector<16xf32> to vector<16x1xf32>
    %65 = vector.broadcast %64 : vector<16x1xf32> to vector<16x128xf32>
    %66 = arith.subf %62, %65 : vector<16x128xf32>
    %67 = math.exp %66 : vector<16x128xf32>
    %68 = arith.mulf %67, %1 : vector<16x128xf32>
    %cst_34 = arith.constant dense<0.000000e+00> : vector<16x128xf32>
    %69 = tpu.matmul %68, %2, %cst_34 {dimension_numbers = #tpu.dot_dimension_numbers<[1], [0], [0], [1], [0, 0, 1, 1], [], []>} : vector<16x128xf32>, vector<128x128xf32>, vector<16x128xf32> -> vector<16x128xf32>
    %70 = vector.broadcast %5 : vector<1x128xf32> to vector<16x128xf32>
    %71 = arith.addf %69, %70 : vector<16x128xf32>
    %72 = tpu.reciprocal %71 : vector<16x128xf32> -> vector<16x128xf32>
    %73 = arith.mulf %68, %72 : vector<16x128xf32>
    %74 = tpu.concatenate %50, %50, %50, %50, %50, %50, %50, %50 in 0 : vector<16x128xf32>, vector<16x128xf32>, vector<16x128xf32>, vector<16x128xf32>, vector<16x128xf32>, vector<16x128xf32>, vector<16x128xf32>, vector<16x128xf32> -> vector<128x128xf32>
    %75 = arith.mulf %74, %3 : vector<128x128xf32>
    %cst_35 = arith.constant dense<0.000000e+00> : vector<16x128xf32>
    %76 = tpu.matmul %73, %75, %cst_35 {dimension_numbers = #tpu.dot_dimension_numbers<[1], [0], [0], [1], [0, 0, 1, 1], [], []>} : vector<16x128xf32>, vector<128x128xf32>, vector<16x128xf32> -> vector<16x128xf32>
    %77 = vector.broadcast %7 : vector<1x128xf32> to vector<16x128xf32>
    %78 = arith.addf %76, %77 : vector<16x128xf32>
    %cst_36 = arith.constant 0.000000e+00 : f32
    %79 = vector.broadcast %cst_36 : f32 to vector<16x128xf32>
    %80 = arith.cmpf ogt, %78, %79 : vector<16x128xf32>
    %81 = math.exp %78 : vector<16x128xf32>
    %cst_37 = arith.constant 1.000000e+00 : f32
    %82 = vector.broadcast %cst_37 : f32 to vector<16x128xf32>
    %83 = arith.subf %81, %82 : vector<16x128xf32>
    %84 = arith.select %80, %78, %83 : vector<16x128xi1>, vector<16x128xf32>
    %c256 = arith.constant 256 : index
    %c0_38 = arith.constant 0 : index
    %85 = vector.load %arg2[%c256, %c0_38] : memref<1200x128xf32, #tpu.memory_space<vmem>>, vector<128x128xf32>
    %cst_39 = arith.constant dense<0.000000e+00> : vector<16x128xf32>
    %86 = tpu.matmul %84, %85, %cst_39 {dimension_numbers = #tpu.dot_dimension_numbers<[1], [0], [0], [1], [0, 0, 1, 1], [], []>} : vector<16x128xf32>, vector<128x128xf32>, vector<16x128xf32> -> vector<16x128xf32>
    %87 = vector.broadcast %8 : vector<1x128xf32> to vector<16x128xf32>
    %88 = arith.addf %86, %87 : vector<16x128xf32>
    %c0_40 = arith.constant 0 : index
    %c0_41 = arith.constant 0 : index
    %89 = vector.load %arg3[%c0_40, %c0_41] : memref<16x128xf32, #tpu.memory_space<vmem>>, vector<16x128xf32>
    tpu.vector_store %arg3[%c0_40, %c0_41], %88 {strides = array<i32>} : memref<16x128xf32, #tpu.memory_space<vmem>>, vector<16x128xf32>,
    return
  }
}

</mosaic_0001>

<bundles_post_ra>
// kernel: tile.9
= control target key start
LH: loop header
LB: loop body
LE: loop exit
PB: predicated region body
PF: predicated region fallthrough
CT: control target
= control target key end

     0   :  { %vm68_vm0 = vcmask 1047556   ;;  %s167_s9 = smov 32   ;;  %s168_s10 = smov 16   ;;  %vm70_vm1 = vcmask 130048   ;;  %vm89_vm2 = vcmask 523648   ;;  %vm110_vm3 = vcmask 392448   ;;  %s259_s0 = inlined_call_operand.vmem [shape: f32[16,4,16], index: 0, kind: input, shape index: {}]   ;;  %s260_s1 = inlined_call_operand.vmem [shape: f32[16,64], index: 1, kind: output, shape index: {}]  }
   0x1   :  { %v152_v0 = vld [vmem:[%s259_s0 + $0x1c] sm:$0xf]  ;;  %v153_v1 = vld [vmem:[%s259_s0 + $0x18] sm:$0xf]  ;;  %v154_v2 = vld [vmem:[%s259_s0 + $0x14] sm:$0xf] }
   0x2   :  { %39 = vst [vmem:[#allocation0 + $0x38] sm:$0xf] %v152_v0  ;;  %v155_v3 = vld [vmem:[%s259_s0 + $0x10] sm:$0xf]  ;;  %v156_v4 = vld [vmem:[%s259_s0 + $0xc] sm:$0xf] }
   0x3   :  { %43 = vst [vmem:[#allocation0 + $0x30] sm:$0xf] %v153_v1  ;;  %v157_v5 = vld [vmem:[%s259_s0 + $0x8] sm:$0xf]  ;;  %v158_v6 = vld [vmem:[%s259_s0 + $0x4] sm:$0xf] }
   0x4   :  { %47 = vst [vmem:[#allocation0 + $0x28] sm:$0xf] %v154_v2  ;;  %v64_v7 = vld [vmem:[%s259_s0] sm:$0xf]  ;;  %v144_v8 = vld [vmem:[%s259_s0 + $0x3c] sm:$0xf] }
   0x5   :  { %51 = vst [vmem:[#allocation0 + $0x20] sm:$0xf] %v155_v3  ;;  %v145_v9 = vld [vmem:[%s259_s0 + $0x38] sm:$0xf]  ;;  %v146_v10 = vld [vmem:[%s259_s0 + $0x34] sm:$0xf] }
   0x6   :  { %55 = vst [vmem:[#allocation0 + $0x18] sm:$0xf] %v156_v4  ;;  %v147_v11 = vld [vmem:[%s259_s0 + $0x30] sm:$0xf]  ;;  %v148_v12 = vld [vmem:[%s259_s0 + $0x2c] sm:$0xf] }
   0x7   :  { %59 = vst [vmem:[#allocation0 + $0x10] sm:$0xf] %v157_v5  ;;  %v149_v13 = vld [vmem:[%s259_s0 + $0x28] sm:$0xf]  ;;  %v150_v15 = vld [vmem:[%s259_s0 + $0x24] sm:$0xf] }
   0x8   :  { %63 = vst [vmem:[#allocation0 + $0x8] sm:$0xf] %v158_v6  ;;  %v151_v17 = vld [vmem:[%s259_s0 + $0x20] sm:$0xf]  ;;  %s166_s0 = smov 48   ;;  %vm131_vm4 = vcmask 261248  }
   0x9   :  { %65 = vst [vmem:[#allocation0] sm:$0xf] %v64_v7 }
   0xa   :  { %7 = vst [vmem:[#allocation0 + $0x78] sm:$0xf] %v144_v8 }
   0xb   :  { %11 = vst [vmem:[#allocation0 + $0x70] sm:$0xf] %v145_v9 }
   0xc   :  { %v84_v14 = vld [vmem:[#allocation0 + $0x3] ss:$8 sm:$0xf0]   ;;  %15 = vst [vmem:[#allocation0 + $0x68] sm:$0xf] %v146_v10 }
   0xd   :  { %v105_v16 = vld [vmem:[#allocation0 + $0x2] ss:$8 sm:$0xf0]   ;;  %19 = vst [vmem:[#allocation0 + $0x60] sm:$0xf] %v147_v11 }
   0xe   :  { %23 = vst [vmem:[#allocation0 + $0x58] sm:$0xf] %v148_v12  ;;  %v126_v18 = vld [vmem:[#allocation0 + $0x1] ss:$8 sm:$0xf0]  }
   0xf   :  { %27 = vst [vmem:[#allocation0 + $0x50] sm:$0xf] %v149_v13  ;;  %v67_v35 = vld [vmem:[#allocation0] ss:$8 sm:$0xf0]  }
  0x10   :  { %v82_v19 = vld [vmem:[#allocation0 + $0x3] ss:$8 sm:$0xf]   ;;  %v103_v20 = vld [vmem:[#allocation0 + $0x2] ss:$8 sm:$0xf]  }
  0x11   :  { %v86_v21 = vsel %vm68_vm0, %v84_v14, %v82_v19  ;;  %v107_v22 = vsel %vm68_vm0, %v105_v16, %v103_v20  ;;  %v124_v23 = vld [vmem:[#allocation0 + $0x1] ss:$8 sm:$0xf]   ;;  %31 = vst [vmem:[#allocation0 + $0x48] sm:$0xf] %v150_v15 }
  0x12   :  { %87 = vrot.lane.b32.xlu0 %v86_v21, %s166_s0  ;;  %108 = vrot.lane.b32.xlu1 %v107_v22, %s167_s9  ;;  %v128_v24 = vsel %vm68_vm0, %v126_v18, %v124_v23  ;;  %35 = vst [vmem:[#allocation0 + $0x40] sm:$0xf] %v151_v17  ;;  %v66_v34 = vld [vmem:[#allocation0] ss:$8 sm:$0xf]  }
  0x13   :  { %129 = vrot.lane.b32.xlu2 %v128_v24, %s168_s10  ;;  %v69_v36 = vsel %vm68_vm0, %v67_v35, %v66_v34 }
  0x14   :  { %v94_v25 = vld [vmem:[#allocation0 + $0x43] ss:$8 sm:$0xf0]   ;;  %v115_v26 = vld [vmem:[#allocation0 + $0x42] ss:$8 sm:$0xf0]  }
  0x15   :  { %v136_v27 = vld [vmem:[#allocation0 + $0x41] ss:$8 sm:$0xf0]   ;;  %71 = vst.msk [vmem:[%s260_s1] sm:$0xff] %vm70_vm1, %v69_v36  }
  0x16   :  { %v75_v38 = vld [vmem:[#allocation0 + $0x40] ss:$8 sm:$0xf0]  }
  0x19   :  { %v92_v28 = vld [vmem:[#allocation0 + $0x43] ss:$8 sm:$0xf]   ;;  %v113_v29 = vld [vmem:[#allocation0 + $0x42] ss:$8 sm:$0xf]  }
  0x1a   :  { %v96_v30 = vsel %vm68_vm0, %v94_v25, %v92_v28  ;;  %v117_v31 = vsel %vm68_vm0, %v115_v26, %v113_v29  ;;  %v134_v32 = vld [vmem:[#allocation0 + $0x41] ss:$8 sm:$0xf]   ;;  %v73_v37 = vld [vmem:[#allocation0 + $0x40] ss:$8 sm:$0xf]  }
  0x1b   :  { %97 = vrot.lane.b32.xlu0 %v96_v30, %s166_s0  ;;  %118 = vrot.lane.b32.xlu1 %v117_v31, %s167_s9  ;;  %v138_v33 = vsel %vm68_vm0, %v136_v27, %v134_v32  ;;  %v77_v40 = vsel %vm68_vm0, %v75_v38, %v73_v37 }
  0x1c   :  { %139 = vrot.lane.b32.xlu2 %v138_v33, %s168_s10  ;;  %159 = vst.msk [vmem:[%s260_s1 + $0x8] sm:$0xff] %vm70_vm1, %v77_v40  }
  0x6d   :  { %v130_v39 = vpop.permute.xlu2 %129  }
  0x76   :  { %v140_v41 = vpop.permute.xlu2 %139  }
  0x84   :  { %v88_v42 = vpop.permute.xlu0 %87   ;;  %v109_v43 = vpop.permute.xlu1 %108  }
  0x85   :  { %90 = vst.msk [vmem:[%s260_s1] sm:$0xff] %vm89_vm2, %v88_v42  }
  0x86   :  { %111 = vst.msk [vmem:[%s260_s1] sm:$0xff] %vm110_vm3, %v109_v43  }
  0x87   :  { %132 = vst.msk [vmem:[%s260_s1] sm:$0xff] %vm131_vm4, %v130_v39  }
  0x8d   :  { %v98_v44 = vpop.permute.xlu0 %97   ;;  %v119_v45 = vpop.permute.xlu1 %118  }
  0x8e   :  { %160 = vst.msk [vmem:[%s260_s1 + $0x8] sm:$0xff] %vm89_vm2, %v98_v44  }
  0x8f   :  { %161 = vst.msk [vmem:[%s260_s1 + $0x8] sm:$0xff] %vm110_vm3, %v119_v45  }
  0x90   :  { %162 = vst.msk [vmem:[%s260_s1 + $0x8] sm:$0xff] %vm131_vm4, %v140_v41  }

// kernel: forward.1
= control target key start
LH: loop header
LB: loop body
LE: loop exit
PB: predicated region body
PF: predicated region fallthrough
CT: control target
= control target key end

     0   :  { %8 = vsyncpa [#allocation3], 0  ;;  %s691_s15 = smov [#allocation2]   ;;  %s692_s17 = smov 128   ;;  %s901_s0 = inlined_call_operand.vmem [shape: f32[16,128], index: 0, kind: input, shape index: {}]   ;;  %s902_s1 = inlined_call_operand.vmem [shape: f32[16,128], index: 1, kind: input, shape index: {}]   ;;  %s903_s2 = inlined_call_operand.hbm [shape: f32[1200,128], index: 2, kind: input, shape index: {}]   ;;  %s904_s3 = inlined_call_operand.vmem [shape: f32[16,128], index: 3, kind: output, shape index: {}]  }
   0x1   :  { %s17_s14 = sshll.u32 %s903_s2, 4  ;;  %s19_s16 = sshll.u32 %s691_s15, 4  ;;  %s18_s14 = int_to_ptr.hbm [resolvable:$true] %s17_s14  ;;  %s20_s16 = int_to_ptr.vmem [resolvable:$true] %s19_s16 }
   0x2   :  { %s693_s18 = smov 8  }
   0x3   :  { %25 = dma.hbm_to_vmem [thread:$0]  %s18_s14, 19200, %s20_s16, [#allocation3], %s692_s17, %s692_s17, %s693_s18  }
   0x4   :  { %689 = dma.done.wait [#allocation3], 19200  }
   0x5   :  { %690 = vsyncadd [#allocation3], 4294948096  ;;  %v87_v0 = vld [vmem:[#allocation2 + $0x78] sm:$0xff]  ;;  %v86_v1 = vld [vmem:[#allocation2 + $0x70] sm:$0xff] }
   0x6   :  { %120 = vmatpush.msra.mxu0 %v87_v0  ;;  %v85_v2 = vld [vmem:[#allocation2 + $0x68] sm:$0xff]  ;;  %v84_v3 = vld [vmem:[#allocation2 + $0x60] sm:$0xff]  ;;  %v83_v4 = vld [vmem:[#allocation2 + $0x58] sm:$0xff] }
   0x7   :  { %v82_v5 = vld [vmem:[#allocation2 + $0x50] sm:$0xff]  ;;  %v119_v6 = vld [vmem:[#allocation2 + $0x278] sm:$0xff]  ;;  %v81_v10 = vld [vmem:[#allocation2 + $0x48] sm:$0xff] }
   0x8   :  { %121 = vmatpush.msra.mxu0 %v86_v1  ;;  %v103_v7 = vld [vmem:[#allocation2 + $0x1f8] sm:$0xff]  ;;  %v118_v8 = vld [vmem:[#allocation2 + $0x270] sm:$0xff]  ;;  %143 = vmatpush.msra.mxu1 %v119_v6  ;;  %v117_v11 = vld [vmem:[#allocation2 + $0x268] sm:$0xff] }
   0x9   :  { %v102_v9 = vld [vmem:[#allocation2 + $0x1f0] sm:$0xff]  ;;  %175 = vmatpush.msra.mxu2 %v103_v7  ;;  %v101_v12 = vld [vmem:[#allocation2 + $0x1e8] sm:$0xff]  ;;  %v80_v13 = vld [vmem:[#allocation2 + $0x40] sm:$0xff] }
   0xa   :  { %122 = vmatpush.msra.mxu0 %v85_v2  ;;  %144 = vmatpush.msra.mxu1 %v118_v8  ;;  %v116_v14 = vld [vmem:[#allocation2 + $0x260] sm:$0xff]  ;;  %v79_v16 = vld [vmem:[#allocation2 + $0x38] sm:$0xff]  ;;  %v78_v19 = vld [vmem:[#allocation2 + $0x30] sm:$0xff] }
   0xb   :  { %176 = vmatpush.msra.mxu2 %v102_v9  ;;  %v100_v15 = vld [vmem:[#allocation2 + $0x1e0] sm:$0xff]  ;;  %v115_v17 = vld [vmem:[#allocation2 + $0x258] sm:$0xff]  ;;  %v114_v20 = vld [vmem:[#allocation2 + $0x250] sm:$0xff] }
   0xc   :  { %123 = vmatpush.msra.mxu0 %v84_v3  ;;  %145 = vmatpush.msra.mxu1 %v117_v11  ;;  %v99_v18 = vld [vmem:[#allocation2 + $0x1d8] sm:$0xff]  ;;  %v98_v21 = vld [vmem:[#allocation2 + $0x1d0] sm:$0xff]  ;;  %v77_v22 = vld [vmem:[#allocation2 + $0x28] sm:$0xff] }
   0xd   :  { %177 = vmatpush.msra.mxu2 %v101_v12  ;;  %v113_v23 = vld [vmem:[#allocation2 + $0x248] sm:$0xff]  ;;  %v76_v25 = vld [vmem:[#allocation2 + $0x20] sm:$0xff]  ;;  %v75_v28 = vld [vmem:[#allocation2 + $0x18] sm:$0xff] }
   0xe   :  { %124 = vmatpush.msra.mxu0 %v83_v4  ;;  %146 = vmatpush.msra.mxu1 %v116_v14  ;;  %v97_v24 = vld [vmem:[#allocation2 + $0x1c8] sm:$0xff]  ;;  %v112_v26 = vld [vmem:[#allocation2 + $0x240] sm:$0xff]  ;;  %v111_v29 = vld [vmem:[#allocation2 + $0x238] sm:$0xff] }
   0xf   :  { %178 = vmatpush.msra.mxu2 %v100_v15  ;;  %v96_v27 = vld [vmem:[#allocation2 + $0x1c0] sm:$0xff]  ;;  %v95_v30 = vld [vmem:[#allocation2 + $0x1b8] sm:$0xff]  ;;  %v74_v31 = vld [vmem:[#allocation2 + $0x10] sm:$0xff] }
  0x10   :  { %125 = vmatpush.msra.mxu0 %v82_v5  ;;  %147 = vmatpush.msra.mxu1 %v115_v17  ;;  %v110_v32 = vld [vmem:[#allocation2 + $0x230] sm:$0xff]  ;;  %v73_v34 = vld [vmem:[#allocation2 + $0x8] sm:$0xff]  ;;  %v72_v37 = vld [vmem:[#allocation2] sm:$0xff] }
  0x11   :  { %179 = vmatpush.msra.mxu2 %v99_v18  ;;  %v94_v33 = vld [vmem:[#allocation2 + $0x1b0] sm:$0xff]  ;;  %v109_v35 = vld [vmem:[#allocation2 + $0x228] sm:$0xff]  ;;  %v108_v38 = vld [vmem:[#allocation2 + $0x220] sm:$0xff] }
  0x12   :  { %126 = vmatpush.msra.mxu0 %v81_v10  ;;  %148 = vmatpush.msra.mxu1 %v114_v20  ;;  %v93_v36 = vld [vmem:[#allocation2 + $0x1a8] sm:$0xff]  ;;  %v30_v39 = vld [vmem:[%s901_s0] sm:$0xff]  ;;  %v107_v41 = vld [vmem:[#allocation2 + $0x218] sm:$0xff] }
  0x13   :  { %180 = vmatpush.msra.mxu2 %v98_v21  ;;  %v92_v40 = vld [vmem:[#allocation2 + $0x1a0] sm:$0xff]  ;;  %v91_v42 = vld [vmem:[#allocation2 + $0x198] sm:$0xff]  ;;  %v106_v43 = vld [vmem:[#allocation2 + $0x210] sm:$0xff] }
  0x14   :  { %127 = vmatpush.msra.mxu0 %v80_v13  ;;  %149 = vmatpush.msra.mxu1 %v113_v23  ;;  %v90_v44 = vld [vmem:[#allocation2 + $0x190] sm:$0xff]  ;;  %v105_v45 = vld [vmem:[#allocation2 + $0x208] sm:$0xff]  ;;  %v104_v48 = vld [vmem:[#allocation2 + $0x200] sm:$0xff] }
  0x15   :  { %181 = vmatpush.msra.mxu2 %v97_v24  ;;  %v89_v46 = vld [vmem:[#allocation2 + $0x188] sm:$0xff]  ;;  %v88_v49 = vld [vmem:[#allocation2 + $0x180] sm:$0xff]  ;;  %v723_v51 = vld [vmem:[#allocation2 + $0x478] sm:$0xff] }
  0x16   :  { %128 = vmatpush.msra.mxu0 %v79_v16  ;;  %150 = vmatpush.msra.mxu1 %v112_v26  ;;  %v31_v47 = vld [vmem:[%s901_s0 + $0x8] sm:$0xff]  ;;  %v725_v53 = vld [vmem:[#allocation2 + $0x470] sm:$0xff]  ;;  %v731_v57 = vld [vmem:[#allocation2 + $0x460] sm:$0xff] }
  0x17   :  { %182 = vmatpush.msra.mxu2 %v96_v27  ;;  %v728_v55 = vld [vmem:[#allocation2 + $0x468] sm:$0xff]  ;;  %v734_v59 = vld [vmem:[#allocation2 + $0x458] sm:$0xff]  ;;  %v737_v61 = vld [vmem:[#allocation2 + $0x450] sm:$0xff] }
  0x18   :  { %129 = vmatpush.msra.mxu0 %v78_v19  ;;  %151 = vmatpush.msra.mxu1 %v111_v29  ;;  %v740_v63 = vld [vmem:[#allocation2 + $0x448] sm:$0xff]  ;;  %v743_v1 = vld [vmem:[#allocation2 + $0x440] sm:$0xff]  ;;  %v746_v3 = vld [vmem:[#allocation2 + $0x438] sm:$0xff] }
  0x19   :  { %183 = vmatpush.msra.mxu2 %v95_v30  ;;  %v749_v5 = vld [vmem:[#allocation2 + $0x430] sm:$0xff]  ;;  %v752_v7 = vld [vmem:[#allocation2 + $0x428] sm:$0xff]  ;;  %v755_v9 = vld [vmem:[#allocation2 + $0x420] sm:$0xff] }
  0x1a   :  { %130 = vmatpush.msra.mxu0 %v77_v22  ;;  %152 = vmatpush.msra.mxu1 %v110_v32  ;;  %v758_v11 = vld [vmem:[#allocation2 + $0x418] sm:$0xff]  ;;  %v761_v13 = vld [vmem:[#allocation2 + $0x410] sm:$0xff]  ;;  %v764_v15 = vld [vmem:[#allocation2 + $0x408] sm:$0xff] }
  0x1b   :  { %184 = vmatpush.msra.mxu2 %v94_v33  ;;  %v767_v17 = vld [vmem:[#allocation2 + $0x400] sm:$0xff]  ;;  %v773_v22 = vld [vmem:[#allocation2 + $0x488] sm:$0xff]  ;;  %v775_v23 = vld [vmem:[#allocation2 + $0x3f8] sm:$0xff] }
  0x1c   :  { %131 = vmatpush.msra.mxu0 %v76_v25  ;;  %153 = vmatpush.msra.mxu1 %v109_v35  ;;  %v771_v21 = vld [vmem:[#allocation2 + $0x480] sm:$0xff]  ;;  %v777_v24 = vld [vmem:[#allocation2 + $0x3f0] sm:$0xff]  ;;  %v781_v26 = vld [vmem:[#allocation2 + $0x3e8] sm:$0xff] }
  0x1d   :  { %185 = vmatpush.msra.mxu2 %v93_v36  ;;  %217 = vmatpush.msra.mxu3 %v775_v23  ;;  %v787_v29 = vld [vmem:[#allocation2 + $0x3e0] sm:$0xff]  ;;  %v795_v33 = vld [vmem:[#allocation2 + $0x3d0] sm:$0xff]  ;;  %v799_v35 = vld [vmem:[#allocation2 + $0x3c8] sm:$0xff] }
  0x1e   :  { %132 = vmatpush.msra.mxu0 %v75_v28  ;;  %154 = vmatpush.msra.mxu1 %v108_v38  ;;  %v803_v38 = vld [vmem:[#allocation2 + $0x3c0] sm:$0xff] }
  0x1f   :  { %186 = vmatpush.msra.mxu2 %v92_v40  ;;  %218 = vmatpush.msra.mxu3 %v777_v24  ;;  %v807_v40 = vld [vmem:[#allocation2 + $0x3b8] sm:$0xff] }
  0x20   :  { %133 = vmatpush.msra.mxu0 %v74_v31  ;;  %155 = vmatpush.msra.mxu1 %v107_v41  ;;  %v791_v31 = vld [vmem:[#allocation2 + $0x3d8] sm:$0xff] }
  0x21   :  { %187 = vmatpush.msra.mxu2 %v91_v42  ;;  %219 = vmatpush.msra.mxu3 %v781_v26 }
  0x22   :  { %134 = vmatpush.msra.mxu0 %v73_v34  ;;  %156 = vmatpush.msra.mxu1 %v106_v43 }
  0x23   :  { %188 = vmatpush.msra.mxu2 %v90_v44  ;;  %220 = vmatpush.msra.mxu3 %v787_v29 }
  0x24   :  { %135 = vmatpush.msra.mxu0 %v72_v37  ;;  %157 = vmatpush.msra.mxu1 %v105_v45 }
  0x25   :  { %136 = vmatmul.f32.vlgmr.msra.gmra.mxu0 %v30_v39  ;;  %189 = vmatpush.msra.mxu2 %v89_v46 }
  0x26   :  { %158 = vmatpush.msra.mxu1 %v104_v48  ;;  %221 = vmatpush.msra.mxu3 %v791_v31 }
  0x27   :  { %190 = vmatpush.msra.mxu2 %v88_v49 }
  0x28   :  { %222 = vmatpush.msra.mxu3 %v795_v33 }
  0x2a   :  { %223 = vmatpush.msra.mxu3 %v799_v35 }
  0x2c   :  { %224 = vmatpush.msra.mxu3 %v803_v38 }
  0x2d   :  { %139 = vmatmul.f32.gmra.mxu0 %v31_v47 }
  0x2e   :  { %225 = vmatpush.msra.mxu3 %v807_v40 }
  0xa2   :  { %v137_v50 = vpop.f32.mrf.mxu0 }
  0xa3   :  { %159 = vmatmul.f32.vlgmr.msra.gmra.mxu1 %v137_v50  ;;  %191 = vmatmul.f32.vlgmr.msra.gmra.mxu2 %v137_v50  ;;  %v284_v56 = vmul.f32 %v137_v50, %v725_v53  ;;  %v282_v60 = vmul.f32 %v137_v50, %v731_v57  ;;  %v280_v0 = vmul.f32 %v137_v50, %v737_v61 }
  0xa4   :  { %v278_v4 = vmul.f32 %v137_v50, %v743_v1  ;;  %v276_v8 = vmul.f32 %v137_v50, %v749_v5  ;;  %v274_v12 = vmul.f32 %v137_v50, %v755_v9  ;;  %v272_v16 = vmul.f32 %v137_v50, %v761_v13 }
  0xa5   :  { %v270_v19 = vmul.f32 %v137_v50, %v767_v17  ;;  %v813_v50 = vld [vmem:[#allocation2 + $0x3b0] sm:$0xff] }
  0xa6   :  { %226 = vmatpush.msra.mxu3 %v813_v50 }
  0xaa   :  { %v140_v52 = vpop.f32.mrf.mxu0 }
  0xab   :  { %162 = vmatmul.f32.gmra.mxu1 %v140_v52  ;;  %194 = vmatmul.f32.gmra.mxu2 %v140_v52  ;;  %v285_v54 = vmul.f32 %v140_v52, %v723_v51  ;;  %v283_v58 = vmul.f32 %v140_v52, %v728_v55  ;;  %v281_v62 = vmul.f32 %v140_v52, %v734_v59 }
  0xac   :  { %v279_v2 = vmul.f32 %v140_v52, %v740_v63  ;;  %v277_v6 = vmul.f32 %v140_v52, %v746_v3  ;;  %v275_v10 = vmul.f32 %v140_v52, %v752_v7  ;;  %v273_v14 = vmul.f32 %v140_v52, %v758_v11 }
  0xad   :  { %287 = vmatpush.msrb.mxu0 %v285_v54  ;;  %v271_v18 = vmul.f32 %v140_v52, %v764_v15  ;;  %v817_v52 = vld [vmem:[#allocation2 + $0x3a8] sm:$0xff]  ;;  %v820_v54 = vld [vmem:[#allocation2 + $0x3a0] sm:$0xff] }
  0xae   :  { %227 = vmatpush.msra.mxu3 %v817_v52 }
  0xaf   :  { %288 = vmatpush.msrb.mxu0 %v284_v56  ;;  %v823_v56 = vld [vmem:[#allocation2 + $0x398] sm:$0xff] }
  0xb0   :  { %228 = vmatpush.msra.mxu3 %v820_v54 }
  0xb1   :  { %289 = vmatpush.msrb.mxu0 %v283_v58  ;;  %v829_v58 = vld [vmem:[#allocation2 + $0x390] sm:$0xff] }
  0xb2   :  { %229 = vmatpush.msra.mxu3 %v823_v56 }
  0xb3   :  { %290 = vmatpush.msrb.mxu0 %v282_v60  ;;  %v833_v60 = vld [vmem:[#allocation2 + $0x388] sm:$0xff] }
  0xb4   :  { %230 = vmatpush.msra.mxu3 %v829_v58 }
  0xb5   :  { %291 = vmatpush.msrb.mxu0 %v281_v62  ;;  %v836_v62 = vld [vmem:[#allocation2 + $0x380] sm:$0xff] }
  0xb6   :  { %231 = vmatpush.msra.mxu3 %v833_v60 }
  0xb7   :  { %292 = vmatpush.msrb.mxu0 %v280_v0 }
  0xb8   :  { %232 = vmatpush.msra.mxu3 %v836_v62 }
  0xb9   :  { %293 = vmatpush.msrb.mxu0 %v279_v2 }
  0xbb   :  { %294 = vmatpush.msrb.mxu0 %v278_v4 }
  0xbd   :  { %295 = vmatpush.msrb.mxu0 %v277_v6 }
  0xbf   :  { %296 = vmatpush.msrb.mxu0 %v276_v8 }
  0xc1   :  { %297 = vmatpush.msrb.mxu0 %v275_v10  ;;  %v844_v10 = vld [vmem:[%s902_s1] sm:$0xff] }
  0xc3   :  { %298 = vmatpush.msrb.mxu0 %v274_v12 }
  0xc5   :  { %299 = vmatpush.msrb.mxu0 %v273_v14 }
  0xc7   :  { %300 = vmatpush.msrb.mxu0 %v272_v16 }
  0xc9   :  { %301 = vmatpush.msrb.mxu0 %v271_v18  ;;  %v850_v18 = vld [vmem:[%s902_s1 + $0x8] sm:$0xff] }
  0xcb   :  { %302 = vmatpush.msrb.mxu0 %v270_v19 }
  0xcd   :  { %464 = vmatpush.msra.mxu0 %v775_v23 }
  0xcf   :  { %465 = vmatpush.msra.mxu0 %v777_v24 }
  0xd1   :  { %466 = vmatpush.msra.mxu0 %v781_v26 }
  0xd3   :  { %467 = vmatpush.msra.mxu0 %v787_v29 }
  0xd5   :  { %468 = vmatpush.msra.mxu0 %v791_v31 }
  0xd7   :  { %469 = vmatpush.msra.mxu0 %v795_v33 }
  0xd9   :  { %470 = vmatpush.msra.mxu0 %v799_v35 }
  0xdb   :  { %471 = vmatpush.msra.mxu0 %v803_v38 }
  0xdd   :  { %472 = vmatpush.msra.mxu0 %v807_v40 }
  0xdf   :  { %473 = vmatpush.msra.mxu0 %v813_v50 }
  0xe1   :  { %474 = vmatpush.msra.mxu0 %v817_v52 }
  0xe3   :  { %475 = vmatpush.msra.mxu0 %v820_v54 }
  0xe5   :  { %476 = vmatpush.msra.mxu0 %v823_v56 }
  0xe7   :  { %477 = vmatpush.msra.mxu0 %v829_v58 }
  0xe9   :  { %478 = vmatpush.msra.mxu0 %v833_v60 }
  0xeb   :  { %479 = vmatpush.msra.mxu0 %v836_v62 }
 0x120   :  { %v160_v20 = vpop.f32.mrf.mxu1 }
 0x121   :  { %v166_v27 = vmul.f32 %v160_v20, %v771_v21 }
 0x126   :  { %v192_v37 = vpop.f32.mrf.mxu2 }
 0x128   :  { %v163_v25 = vpop.f32.mrf.mxu1 }
 0x129   :  { %v167_v28 = vmul.f32 %v163_v25, %v773_v22  ;;  %v853_v25 = vld [vmem:[#allocation2 + $0x490] ss:$0 sm:$0xff] }
 0x12b   :  { %v168_v30 = vadd.f32 %v167_v28, %v166_v27  ;;  %v335_v27 = vld [vmem:[#allocation2 + $0xf8] sm:$0xff]  ;;  %v334_v28 = vld [vmem:[#allocation2 + $0xf0] sm:$0xff] }
 0x12c   :  { %368 = vmatpush.msrb.mxu1 %v335_v27 }
 0x12d   :  { %v169_v32 = vrot.slane %v168_v30, 4 }
 0x12e   :  { %v195_v45 = vpop.f32.mrf.mxu2  ;;  %369 = vmatpush.msrb.mxu1 %v334_v28 }
 0x12f   :  { %v170_v34 = vadd.f32 %v169_v32, %v168_v30  ;;  %v333_v32 = vld [vmem:[#allocation2 + $0xe8] sm:$0xff] }
 0x130   :  { %370 = vmatpush.msrb.mxu1 %v333_v32 }
 0x131   :  { %v171_v36 = vrot.slane %v170_v34, 2 }
 0x133   :  { %v172_v39 = vadd.f32 %v171_v36, %v170_v34  ;;  %v332_v36 = vld [vmem:[#allocation2 + $0xe0] sm:$0xff] }
 0x134   :  { %371 = vmatpush.msrb.mxu1 %v332_v36 }
 0x135   :  { %v173_v41 = vrot.slane %v172_v39, 1 }
 0x137   :  { %v174_v42 = vadd.f32 %v173_v41, %v172_v39  ;;  %v330_v39 = vld [vmem:[#allocation2 + $0xd0] sm:$0xff] }
 0x139   :  { %v193_v43 = vadd.f32 %v192_v37, %v174_v42  ;;  %v196_v46 = vadd.f32 %v195_v45, %v174_v42  ;;  %v331_v37 = vld [vmem:[#allocation2 + $0xd8] sm:$0xff]  ;;  %v329_v42 = vld [vmem:[#allocation2 + $0xc8] sm:$0xff] }
 0x13a   :  { %372 = vmatpush.msrb.mxu1 %v331_v37 }
 0x13b   :  { %vm198_vm0 = vcmp.gt.f32.partialorder %v193_v43, 0.0  ;;  %v200_v44 = vmul.f32 0.2, %v193_v43  ;;  %v201_v48 = vmul.f32 0.2, %v196_v46  ;;  %vm199_vm1 = vcmp.gt.f32.partialorder %v196_v46, 0.0 }
 0x13c   :  { %373 = vmatpush.msrb.mxu1 %v330_v39 }
 0x13d   :  { %v202_v47 = vsel %vm198_vm0, %v193_v43, %v200_v44  ;;  %v203_v49 = vsel %vm199_vm1, %v196_v46, %v201_v48  ;;  %v328_v46 = vld [vmem:[#allocation2 + $0xc0] sm:$0xff] }
 0x13e   :  { %204 = vmax.xlane.f32.xlu0 %v202_v47  ;;  %374 = vmatpush.msrb.mxu1 %v329_v42  ;;  %v327_v42 = vld [vmem:[#allocation2 + $0xb8] sm:$0xff] }
 0x140   :  { %375 = vmatpush.msrb.mxu1 %v328_v46  ;;  %v323_v46 = vld [vmem:[#allocation2 + $0x98] sm:$0xff] }
 0x142   :  { %376 = vmatpush.msrb.mxu1 %v327_v42  ;;  %v344_v42 = vld [vmem:[#allocation2 + $0x2c0] sm:$0xff] }
 0x146   :  { %206 = vmax.xlane.f32.xlu0 %v203_v49 }
 0x1b1   :  { %v205_v0 = vpop.xlane.xlu0 %204 }
 0x1b2   :  { %v208_v2 = vsub.f32 %v202_v47, %v205_v0 }
 0x1b4   :  { %v210_v4 = vmul.f32 1.442695, %v208_v2 }
 0x1b6   :  { %641 = vpow2.f32 %v210_v4 }
 0x1b9   :  { %v207_v6 = vpop.xlane.xlu0 %206 }
 0x1ba   :  { %v209_v8 = vsub.f32 %v203_v49, %v207_v6 }
 0x1bc   :  { %v642_v12 = vpop.eup %641  ;;  %v212_v14 = vmul.f32 1.442695, %v209_v8 }
 0x1bd   :  { %v214_v16 = vmul.f32 %v642_v12, %v844_v10 }
 0x1be   :  { %643 = vpow2.f32 %v212_v14 }
 0x1bf   :  { %233 = vmatmul.f32.vlgmr.msra.gmra.mxu3 %v214_v16 }
 0x1c4   :  { %v644_v19 = vpop.eup %643 }
 0x1c5   :  { %v215_v20 = vmul.f32 %v644_v19, %v850_v18 }
 0x1c7   :  { %236 = vmatmul.f32.gmra.mxu3 %v215_v20 }
 0x242   :  { %v234_v30 = vpop.f32.mrf.mxu3 }
 0x243   :  { %v235_v34 = vadd.f32 %v853_v25, %v234_v30 }
 0x245   :  { %645 = vrcp.f32 %v235_v34  ;;  %v251_v48 = vand.u32 2147483648, %v235_v34  ;;  %v249_v0 = vand.u32 2147483647, %v235_v34  ;;  %vm245_vm3 = vweird.f32 %v235_v34 }
 0x247   :  { %v252_v6 = vor.u32 1.1754944e-38, %v251_v48  ;;  %vm250_vm5 = vcmp.eq.f32.partialorder %v249_v0, 8.507059e+37  ;;  %v320_v48 = vld [vmem:[#allocation2 + $0x80] sm:$0xff]  ;;  %v351_v0 = vld [vmem:[#allocation2 + $0x2f8] sm:$0xff] }
 0x248   :  { %423 = vmatpush.msrb.mxu3 %v351_v0 }
 0x24a   :  { %v237_v41 = vpop.f32.mrf.mxu3 }
 0x24b   :  { %v646_v43 = vpop.eup %645  ;;  %v238_v44 = vadd.f32 %v853_v25, %v237_v41 }
 0x24c   :  { %v241_v45 = vmul.f32 %v646_v43, %v235_v34  ;;  %vm246_vm2 = vweird.f32 %v646_v43 }
 0x24d   :  { %647 = vrcp.f32 %v238_v44  ;;  %vm247_vm4 = vmor %vm245_vm3, %vm246_vm2  ;;  %v265_v28 = vand.u32 2147483648, %v238_v44  ;;  %v263_v32 = vand.u32 2147483647, %v238_v44  ;;  %vm259_vm7 = vweird.f32 %v238_v44 }
 0x24e   :  { %v242_v47 = vsub.f32 1.0, %v241_v45  ;;  %v324_v45 = vld [vmem:[#allocation2 + $0xa0] sm:$0xff] }
 0x24f   :  { %v266_v37 = vor.u32 1.1754944e-38, %v265_v28  ;;  %vm264_vm9 = vcmp.eq.f32.partialorder %v263_v32, 8.507059e+37  ;;  %v362_v28 = vld [vmem:[#allocation2 + $0x350] sm:$0xff] }
 0x250   :  { %v243_v49 = vmul.f32 %v646_v43, %v242_v47  ;;  %v322_v47 = vld [vmem:[#allocation2 + $0x90] sm:$0xff] }
 0x252   :  { %v244_v2 = vadd.f32 %v646_v43, %v243_v49  ;;  %v367_v49 = vld [vmem:[#allocation2 + $0x378] sm:$0xff] }
 0x253   :  { %v648_v4 = vpop.eup %647  ;;  %391 = vmatpush.msrb.mxu2 %v367_v49  ;;  %v341_v49 = vld [vmem:[#allocation2 + $0x2a8] sm:$0xff] }
 0x254   :  { %v255_v8 = vmul.f32 %v648_v4, %v238_v44  ;;  %v248_v12 = vsel %vm247_vm4, %v646_v43, %v244_v2  ;;  %vm260_vm6 = vweird.f32 %v648_v4  ;;  %v326_v43 = vld [vmem:[#allocation2 + $0xb0] sm:$0xff]  ;;  %v321_v44 = vld [vmem:[#allocation2 + $0x88] sm:$0xff] }
 0x255   :  { %v253_v14 = vsel %vm250_vm5, %v252_v6, %v248_v12  ;;  %vm261_vm8 = vmor %vm259_vm7, %vm260_vm6  ;;  %377 = vmatpush.msrb.mxu1 %v326_v43  ;;  %v350_v2 = vld [vmem:[#allocation2 + $0x2f0] sm:$0xff]  ;;  %v349_v6 = vld [vmem:[#allocation2 + $0x2e8] sm:$0xff] }
 0x256   :  { %v268_v19 = vmul.f32 %v253_v14, %v214_v16  ;;  %v256_v27 = vsub.f32 1.0, %v255_v8  ;;  %v325_v16 = vld [vmem:[#allocation2 + $0xa8] sm:$0xff]  ;;  %424 = vmatpush.msrb.mxu3 %v350_v2  ;;  %v364_v8 = vld [vmem:[#allocation2 + $0x360] sm:$0xff]  ;;  %v638_v14 = vld [vmem:[#allocation2 + $0x498] ss:$0 sm:$0xff] }
 0x257   :  { %378 = vmatpush.msrb.mxu1 %v325_v16  ;;  %v348_v12 = vld [vmem:[#allocation2 + $0x2e0] sm:$0xff]  ;;  %v359_v43 = vld [vmem:[#allocation2 + $0x338] sm:$0xff] }
 0x258   :  { %303 = vmatmul.f32.vlgmr.msrb.gmra.mxu0 %v268_v19  ;;  %v257_v30 = vmul.f32 %v648_v4, %v256_v27  ;;  %425 = vmatpush.msrb.mxu3 %v349_v6  ;;  %v363_v19 = vld [vmem:[#allocation2 + $0x358] sm:$0xff]  ;;  %v356_v2 = vld [vmem:[#allocation2 + $0x320] sm:$0xff] }
 0x259   :  { %379 = vmatpush.msrb.mxu1 %v324_v45  ;;  %v347_v27 = vld [vmem:[#allocation2 + $0x2d8] sm:$0xff]  ;;  %v358_v45 = vld [vmem:[#allocation2 + $0x330] sm:$0xff] }
 0x25a   :  { %v258_v36 = vadd.f32 %v648_v4, %v257_v30  ;;  %426 = vmatpush.msrb.mxu3 %v348_v12  ;;  %v346_v30 = vld [vmem:[#allocation2 + $0x2d0] sm:$0xff]  ;;  %v343_v16 = vld [vmem:[#allocation2 + $0x2b8] sm:$0xff] }
 0x25b   :  { %380 = vmatpush.msrb.mxu1 %v323_v46  ;;  %v342_v46 = vld [vmem:[#allocation2 + $0x2b0] sm:$0xff]  ;;  %v339_v12 = vld [vmem:[#allocation2 + $0x298] sm:$0xff] }
 0x25c   :  { %v262_v39 = vsel %vm261_vm8, %v648_v4, %v258_v36  ;;  %v365_v4 = vld [vmem:[#allocation2 + $0x368] sm:$0xff]  ;;  %427 = vmatpush.msrb.mxu3 %v347_v27  ;;  %v338_v27 = vld [vmem:[#allocation2 + $0x290] sm:$0xff] }
 0x25d   :  { %v267_v34 = vsel %vm264_vm9, %v266_v37, %v262_v39  ;;  %381 = vmatpush.msrb.mxu1 %v322_v47  ;;  %v361_v37 = vld [vmem:[#allocation2 + $0x348] sm:$0xff] }
 0x25e   :  { %v269_v41 = vmul.f32 %v267_v34, %v215_v20  ;;  %v366_v20 = vld [vmem:[#allocation2 + $0x370] sm:$0xff]  ;;  %v345_v39 = vld [vmem:[#allocation2 + $0x2c8] sm:$0xff]  ;;  %428 = vmatpush.msrb.mxu3 %v346_v30 }
 0x25f   :  { %382 = vmatpush.msrb.mxu1 %v321_v44  ;;  %392 = vmatpush.msrb.mxu2 %v366_v20  ;;  %v337_v30 = vld [vmem:[#allocation2 + $0x288] sm:$0xff] }
 0x260   :  { %306 = vmatmul.f32.gmra.mxu0 %v269_v41  ;;  %v360_v41 = vld [vmem:[#allocation2 + $0x340] sm:$0xff]  ;;  %429 = vmatpush.msrb.mxu3 %v345_v39 }
 0x261   :  { %383 = vmatpush.msrb.mxu1 %v320_v48  ;;  %393 = vmatpush.msrb.mxu2 %v365_v4  ;;  %v357_v48 = vld [vmem:[#allocation2 + $0x328] sm:$0xff]  ;;  %v340_v4 = vld [vmem:[#allocation2 + $0x2a0] sm:$0xff] }
 0x262   :  { %430 = vmatpush.msrb.mxu3 %v344_v42 }
 0x263   :  { %394 = vmatpush.msrb.mxu2 %v364_v8  ;;  %v355_v8 = vld [vmem:[#allocation2 + $0x318] sm:$0xff] }
 0x264   :  { %431 = vmatpush.msrb.mxu3 %v343_v16 }
 0x265   :  { %395 = vmatpush.msrb.mxu2 %v363_v19 }
 0x266   :  { %432 = vmatpush.msrb.mxu3 %v342_v46 }
 0x267   :  { %396 = vmatpush.msrb.mxu2 %v362_v28  ;;  %v353_v28 = vld [vmem:[#allocation2 + $0x308] sm:$0xff] }
 0x268   :  { %433 = vmatpush.msrb.mxu3 %v341_v49 }
 0x269   :  { %397 = vmatpush.msrb.mxu2 %v361_v37 }
 0x26a   :  { %434 = vmatpush.msrb.mxu3 %v340_v4 }
 0x26b   :  { %398 = vmatpush.msrb.mxu2 %v360_v41 }
 0x26c   :  { %435 = vmatpush.msrb.mxu3 %v339_v12  ;;  %v581_v12 = vld [vmem:[#allocation2 + $0x170] sm:$0xff] }
 0x26d   :  { %399 = vmatpush.msrb.mxu2 %v359_v43 }
 0x26e   :  { %436 = vmatpush.msrb.mxu3 %v338_v27 }
 0x26f   :  { %400 = vmatpush.msrb.mxu2 %v358_v45 }
 0x270   :  { %437 = vmatpush.msrb.mxu3 %v337_v30 }
 0x271   :  { %401 = vmatpush.msrb.mxu2 %v357_v48 }
 0x273   :  { %402 = vmatpush.msrb.mxu2 %v356_v2 }
 0x275   :  { %403 = vmatpush.msrb.mxu2 %v355_v8  ;;  %v582_v8 = vld [vmem:[#allocation2 + $0x178] sm:$0xff] }
 0x2d5   :  { %v304_v32 = vpop.f32.mrf.mxu0 }
 0x2d6   :  { %v305_v36 = vadd.f32 %v638_v14, %v304_v32 }
 0x2d8   :  { %v312_v34 = vmul.f32 1.442695, %v305_v36  ;;  %vm310_vm10 = vcmp.gt.f32.partialorder %v305_v36, 0.0 }
 0x2da   :  { %649 = vpow2.f32 %v312_v34  ;;  %v352_v34 = vld [vmem:[#allocation2 + $0x300] sm:$0xff] }
 0x2dd   :  { %v307_v47 = vpop.f32.mrf.mxu0 }
 0x2de   :  { %v308_v44 = vadd.f32 %v638_v14, %v307_v47  ;;  %v354_v14 = vld [vmem:[#allocation2 + $0x310] sm:$0xff] }
 0x2df   :  { %404 = vmatpush.msrb.mxu2 %v354_v14  ;;  %v579_v14 = vld [vmem:[#allocation2 + $0x160] sm:$0xff] }
 0x2e0   :  { %v650_v0 = vpop.eup %649  ;;  %v314_v20 = vmul.f32 1.442695, %v308_v44  ;;  %vm311_vm11 = vcmp.gt.f32.partialorder %v308_v44, 0.0 }
 0x2e1   :  { %v614_v6 = vadd.f32 -1.0, %v650_v0  ;;  %405 = vmatpush.msrb.mxu2 %v353_v28 }
 0x2e2   :  { %651 = vpow2.f32 %v314_v20 }
 0x2e3   :  { %v318_v19 = vsel %vm310_vm10, %v305_v36, %v614_v6  ;;  %v336_v36 = vld [vmem:[#allocation2 + $0x280] sm:$0xff]  ;;  %406 = vmatpush.msrb.mxu2 %v352_v34 }
 0x2e4   :  { %384 = vmatmul.f32.vlgmr.msrb.gmra.mxu1 %v318_v19  ;;  %438 = vmatpush.msrb.mxu3 %v336_v36  ;;  %v580_v19 = vld [vmem:[#allocation2 + $0x168] sm:$0xff] }
 0x2e5   :  { %584 = vmatpush.msra.mxu2 %v582_v8  ;;  %v576_v36 = vld [vmem:[#allocation2 + $0x148] sm:$0xff] }
 0x2e6   :  { %618 = vmatpush.msra.mxu3 %v775_v23 }
 0x2e7   :  { %585 = vmatpush.msra.mxu2 %v581_v12 }
 0x2e8   :  { %v652_v32 = vpop.eup %651  ;;  %619 = vmatpush.msra.mxu3 %v777_v24 }
 0x2e9   :  { %v615_v37 = vadd.f32 -1.0, %v652_v32  ;;  %586 = vmatpush.msra.mxu2 %v580_v19  ;;  %v577_v32 = vld [vmem:[#allocation2 + $0x150] sm:$0xff] }
 0x2ea   :  { %620 = vmatpush.msra.mxu3 %v781_v26 }
 0x2eb   :  { %v319_v39 = vsel %vm311_vm11, %v308_v44, %v615_v37  ;;  %587 = vmatpush.msra.mxu2 %v579_v14 }
 0x2ec   :  { %387 = vmatmul.f32.gmra.mxu1 %v319_v39  ;;  %621 = vmatpush.msra.mxu3 %v787_v29 }
 0x2ee   :  { %622 = vmatpush.msra.mxu3 %v791_v31 }
 0x2f0   :  { %623 = vmatpush.msra.mxu3 %v795_v33 }
 0x2f2   :  { %624 = vmatpush.msra.mxu3 %v799_v35 }
 0x2f4   :  { %625 = vmatpush.msra.mxu3 %v803_v38 }
 0x2f6   :  { %626 = vmatpush.msra.mxu3 %v807_v40 }
 0x2f8   :  { %627 = vmatpush.msra.mxu3 %v813_v50 }
 0x2fa   :  { %628 = vmatpush.msra.mxu3 %v817_v52 }
 0x2fc   :  { %629 = vmatpush.msra.mxu3 %v820_v54 }
 0x2fe   :  { %630 = vmatpush.msra.mxu3 %v823_v56 }
 0x300   :  { %631 = vmatpush.msra.mxu3 %v829_v58 }
 0x302   :  { %632 = vmatpush.msra.mxu3 %v833_v60 }
 0x304   :  { %633 = vmatpush.msra.mxu3 %v836_v62 }
 0x361   :  { %v385_v23 = vpop.f32.mrf.mxu1 }
 0x362   :  { %407 = vmatmul.f32.vlgmr.msrb.gmra.mxu2 %v385_v23  ;;  %439 = vmatmul.f32.vlgmr.msrb.gmra.mxu3 %v385_v23  ;;  %v531_v29 = vmul.f32 %v385_v23, %v725_v53  ;;  %v529_v33 = vmul.f32 %v385_v23, %v731_v57  ;;  %v527_v38 = vmul.f32 %v385_v23, %v737_v61 }
 0x369   :  { %v388_v24 = vpop.f32.mrf.mxu1 }
 0x36a   :  { %410 = vmatmul.f32.gmra.mxu2 %v388_v24  ;;  %442 = vmatmul.f32.gmra.mxu3 %v388_v24  ;;  %v532_v26 = vmul.f32 %v388_v24, %v723_v51  ;;  %v530_v31 = vmul.f32 %v388_v24, %v728_v55  ;;  %v528_v35 = vmul.f32 %v388_v24, %v734_v59 }
 0x36b   :  { %v526_v40 = vmul.f32 %v388_v24, %v740_v63  ;;  %v525_v51 = vmul.f32 %v385_v23, %v743_v1  ;;  %v524_v53 = vmul.f32 %v388_v24, %v746_v3  ;;  %v523_v55 = vmul.f32 %v385_v23, %v749_v5 }
 0x36c   :  { %534 = vmatpush.msra.mxu1 %v532_v26  ;;  %v522_v57 = vmul.f32 %v388_v24, %v752_v7  ;;  %v521_v59 = vmul.f32 %v385_v23, %v755_v9  ;;  %v520_v61 = vmul.f32 %v388_v24, %v758_v11  ;;  %v519_v63 = vmul.f32 %v385_v23, %v761_v13  ;;  %v575_v26 = vld [vmem:[#allocation2 + $0x140] sm:$0xff] }
 0x36d   :  { %v518_v1 = vmul.f32 %v388_v24, %v764_v15  ;;  %v517_v3 = vmul.f32 %v385_v23, %v767_v17 }
 0x36e   :  { %535 = vmatpush.msra.mxu1 %v531_v29 }
 0x370   :  { %536 = vmatpush.msra.mxu1 %v530_v31 }
 0x372   :  { %537 = vmatpush.msra.mxu1 %v529_v33 }
 0x374   :  { %538 = vmatpush.msra.mxu1 %v528_v35 }
 0x376   :  { %539 = vmatpush.msra.mxu1 %v527_v38 }
 0x378   :  { %540 = vmatpush.msra.mxu1 %v526_v40 }
 0x37a   :  { %541 = vmatpush.msra.mxu1 %v525_v51 }
 0x37c   :  { %542 = vmatpush.msra.mxu1 %v524_v53 }
 0x37e   :  { %543 = vmatpush.msra.mxu1 %v523_v55 }
 0x380   :  { %544 = vmatpush.msra.mxu1 %v522_v57 }
 0x382   :  { %545 = vmatpush.msra.mxu1 %v521_v59 }
 0x384   :  { %546 = vmatpush.msra.mxu1 %v520_v61 }
 0x386   :  { %547 = vmatpush.msra.mxu1 %v519_v63 }
 0x388   :  { %548 = vmatpush.msra.mxu1 %v518_v1 }
 0x38a   :  { %549 = vmatpush.msra.mxu1 %v517_v3  ;;  %v574_v3 = vld [vmem:[#allocation2 + $0x138] sm:$0xff] }
 0x3e5   :  { %v408_v5 = vpop.f32.mrf.mxu2  ;;  %v440_v58 = vpop.f32.mrf.mxu3 }
 0x3e6   :  { %v414_v7 = vmul.f32 %v408_v5, %v771_v21  ;;  %v573_v5 = vld [vmem:[#allocation2 + $0x130] sm:$0xff] }
 0x3ed   :  { %v411_v50 = vpop.f32.mrf.mxu2  ;;  %v443_v42 = vpop.f32.mrf.mxu3 }
 0x3ee   :  { %v415_v52 = vmul.f32 %v411_v50, %v773_v22  ;;  %v572_v50 = vld [vmem:[#allocation2 + $0x128] sm:$0xff] }
 0x3f0   :  { %v416_v9 = vadd.f32 %v415_v52, %v414_v7  ;;  %v571_v7 = vld [vmem:[#allocation2 + $0x120] sm:$0xff]  ;;  %v570_v52 = vld [vmem:[#allocation2 + $0x118] sm:$0xff] }
 0x3f2   :  { %v417_v54 = vrot.slane %v416_v9, 4 }
 0x3f4   :  { %v418_v56 = vadd.f32 %v417_v54, %v416_v9  ;;  %v569_v9 = vld [vmem:[#allocation2 + $0x110] sm:$0xff]  ;;  %v568_v54 = vld [vmem:[#allocation2 + $0x108] sm:$0xff] }
 0x3f6   :  { %v419_v11 = vrot.slane %v418_v56, 2 }
 0x3f8   :  { %v420_v60 = vadd.f32 %v419_v11, %v418_v56  ;;  %v567_v56 = vld [vmem:[#allocation2 + $0x100] sm:$0xff] }
 0x3f9   :  { %v639_v11 = vld [vmem:[#allocation2 + $0x4a0] ss:$0 sm:$0xff] }
 0x3fa   :  { %v421_v13 = vrot.slane %v420_v60, 1 }
 0x3fc   :  { %v422_v62 = vadd.f32 %v421_v13, %v420_v60 }
 0x3fe   :  { %v441_v41 = vadd.f32 %v440_v58, %v422_v62  ;;  %v444_v17 = vadd.f32 %v443_v42, %v422_v62 }
 0x400   :  { %vm446_vm12 = vcmp.gt.f32.partialorder %v441_v41, 0.0  ;;  %v448_v15 = vmul.f32 0.2, %v441_v41  ;;  %v449_v16 = vmul.f32 0.2, %v444_v17  ;;  %vm447_vm13 = vcmp.gt.f32.partialorder %v444_v17, 0.0 }
 0x402   :  { %v450_v43 = vsel %vm446_vm12, %v441_v41, %v448_v15  ;;  %v451_v21 = vsel %vm447_vm13, %v444_v17, %v449_v16 }
 0x403   :  { %452 = vmax.xlane.f32.xlu1 %v450_v43 }
 0x40b   :  { %454 = vmax.xlane.f32.xlu1 %v451_v21 }
 0x476   :  { %v453_v22 = vpop.xlane.xlu1 %452 }
 0x477   :  { %v456_v45 = vsub.f32 %v450_v43, %v453_v22 }
 0x479   :  { %v458_v46 = vmul.f32 1.442695, %v456_v45  ;;  %v640_v45 = vld [vmem:[#allocation2 + $0x4a8] ss:$0 sm:$0xff] }
 0x47b   :  { %653 = vpow2.f32 %v458_v46 }
 0x47e   :  { %v455_v47 = vpop.xlane.xlu1 %454 }
 0x47f   :  { %v457_v44 = vsub.f32 %v451_v21, %v455_v47 }
 0x481   :  { %v654_v48 = vpop.eup %653  ;;  %v460_v49 = vmul.f32 1.442695, %v457_v44 }
 0x482   :  { %v462_v0 = vmul.f32 %v654_v48, %v844_v10  ;;  %v578_v10 = vld [vmem:[#allocation2 + $0x158] sm:$0xff] }
 0x483   :  { %655 = vpow2.f32 %v460_v49  ;;  %588 = vmatpush.msra.mxu2 %v578_v10 }
 0x484   :  { %480 = vmatmul.f32.vlgmr.msra.gmra.mxu0 %v462_v0 }
 0x485   :  { %589 = vmatpush.msra.mxu2 %v577_v32 }
 0x487   :  { %590 = vmatpush.msra.mxu2 %v576_v36 }
 0x489   :  { %v656_v20 = vpop.eup %655  ;;  %591 = vmatpush.msra.mxu2 %v575_v26 }
 0x48a   :  { %v463_v2 = vmul.f32 %v656_v20, %v850_v18 }
 0x48b   :  { %592 = vmatpush.msra.mxu2 %v574_v3 }
 0x48c   :  { %483 = vmatmul.f32.vlgmr.msra.gmra.mxu3 %v463_v2 }
 0x48d   :  { %593 = vmatpush.msra.mxu2 %v573_v5 }
 0x48f   :  { %594 = vmatpush.msra.mxu2 %v572_v50 }
 0x491   :  { %595 = vmatpush.msra.mxu2 %v571_v7 }
 0x493   :  { %596 = vmatpush.msra.mxu2 %v570_v52 }
 0x495   :  { %597 = vmatpush.msra.mxu2 %v569_v9 }
 0x497   :  { %598 = vmatpush.msra.mxu2 %v568_v54 }
 0x499   :  { %599 = vmatpush.msra.mxu2 %v567_v56 }
 0x501   :  { %v481_v4 = vpop.f32.mrf.mxu0 }
 0x502   :  { %v482_v6 = vadd.f32 %v853_v25, %v481_v4 }
 0x504   :  { %657 = vrcp.f32 %v482_v6  ;;  %v498_v37 = vand.u32 2147483648, %v482_v6  ;;  %v496_v34 = vand.u32 2147483647, %v482_v6  ;;  %vm492_vm15 = vweird.f32 %v482_v6 }
 0x506   :  { %v499_v29 = vor.u32 1.1754944e-38, %v498_v37  ;;  %vm497_vm1 = vcmp.eq.f32.partialorder %v496_v34, 8.507059e+37 }
 0x50a   :  { %v658_v27 = vpop.eup %657 }
 0x50b   :  { %v488_v28 = vmul.f32 %v658_v27, %v482_v6  ;;  %vm493_vm14 = vweird.f32 %v658_v27 }
 0x50c   :  { %vm494_vm0 = vmor %vm492_vm15, %vm493_vm14 }
 0x50d   :  { %v489_v30 = vsub.f32 1.0, %v488_v28 }
 0x50f   :  { %v490_v18 = vmul.f32 %v658_v27, %v489_v30  ;;  %v484_v39 = vpop.f32.mrf.mxu3 }
 0x510   :  { %v485_v23 = vadd.f32 %v853_v25, %v484_v39 }
 0x511   :  { %v491_v24 = vadd.f32 %v658_v27, %v490_v18 }
 0x512   :  { %659 = vrcp.f32 %v485_v23  ;;  %v512_v53 = vand.u32 2147483648, %v485_v23  ;;  %v510_v25 = vand.u32 2147483647, %v485_v23  ;;  %vm506_vm3 = vweird.f32 %v485_v23 }
 0x513   :  { %v495_v31 = vsel %vm494_vm0, %v658_v27, %v491_v24 }
 0x514   :  { %v500_v33 = vsel %vm497_vm1, %v499_v29, %v495_v31  ;;  %v513_v59 = vor.u32 1.1754944e-38, %v512_v53  ;;  %vm511_vm5 = vcmp.eq.f32.partialorder %v510_v25, 8.507059e+37 }
 0x515   :  { %v515_v35 = vmul.f32 %v500_v33, %v462_v0 }
 0x517   :  { %550 = vmatmul.f32.vlgmr.msra.gmra.mxu1 %v515_v35 }
 0x518   :  { %v660_v38 = vpop.eup %659 }
 0x519   :  { %v502_v40 = vmul.f32 %v660_v38, %v485_v23  ;;  %vm507_vm2 = vweird.f32 %v660_v38 }
 0x51a   :  { %vm508_vm4 = vmor %vm506_vm3, %vm507_vm2 }
 0x51b   :  { %v503_v51 = vsub.f32 1.0, %v502_v40 }
 0x51d   :  { %v504_v55 = vmul.f32 %v660_v38, %v503_v51 }
 0x51f   :  { %v505_v57 = vadd.f32 %v660_v38, %v504_v55 }
 0x521   :  { %v509_v61 = vsel %vm508_vm4, %v660_v38, %v505_v57 }
 0x522   :  { %v514_v63 = vsel %vm511_vm5, %v513_v59, %v509_v61 }
 0x523   :  { %v516_v1 = vmul.f32 %v514_v63, %v463_v2 }
 0x525   :  { %553 = vmatmul.f32.gmra.mxu1 %v516_v1 }
 0x594   :  { %v551_v58 = vpop.f32.mrf.mxu1 }
 0x595   :  { %v552_v60 = vadd.f32 %v639_v11, %v551_v58 }
 0x597   :  { %v559_v13 = vmul.f32 1.442695, %v552_v60  ;;  %vm557_vm6 = vcmp.gt.f32.partialorder %v552_v60, 0.0 }
 0x599   :  { %661 = vpow2.f32 %v559_v13 }
 0x59f   :  { %v662_v62 = vpop.eup %661 }
 0x5a0   :  { %v616_v41 = vadd.f32 -1.0, %v662_v62 }
 0x5a2   :  { %v554_v15 = vpop.f32.mrf.mxu1  ;;  %v565_v42 = vsel %vm557_vm6, %v552_v60, %v616_v41 }
 0x5a3   :  { %v555_v17 = vadd.f32 %v639_v11, %v554_v15  ;;  %600 = vmatmul.f32.vlgmr.msra.gmra.mxu2 %v565_v42 }
 0x5a5   :  { %v561_v43 = vmul.f32 1.442695, %v555_v17  ;;  %vm558_vm7 = vcmp.gt.f32.partialorder %v555_v17, 0.0 }
 0x5a7   :  { %663 = vpow2.f32 %v561_v43 }
 0x5ad   :  { %v664_v16 = vpop.eup %663 }
 0x5ae   :  { %v617_v21 = vadd.f32 -1.0, %v664_v16 }
 0x5b0   :  { %v566_v22 = vsel %vm558_vm7, %v555_v17, %v617_v21 }
 0x5b1   :  { %603 = vmatmul.f32.gmra.mxu2 %v566_v22 }
 0x626   :  { %v601_v46 = vpop.f32.mrf.mxu2 }
 0x627   :  { %v602_v47 = vadd.f32 %v640_v45, %v601_v46 }
 0x629   :  { %607 = vst [vmem:[%s904_s3] sm:$0xff] %v602_v47 }
 0x634   :  { %v604_v44 = vpop.f32.mrf.mxu2 }
 0x635   :  { %v605_v48 = vadd.f32 %v640_v45, %v604_v44 }
 0x637   :  { %608 = vst [vmem:[%s904_s3 + $0x8] sm:$0xff] %v605_v48 }
 0x638   :  { %613 = vsyncpa [#allocation3], 1 }

</bundles_post_ra>
